<compile_context>
chip_gen: v6e
topology: v6e:2x2x1
jax: 0.10.0
libtpu: 0.0.40
codegen_flags: <defaults>
</compile_context>

<pallas_src>
import functools

import jax
import jax.numpy as jnp
from jax import lax
from jax.experimental import pallas as pl
from jax.experimental.pallas import tpu as pltpu


def _attention_kernel(x_ref, w_ref, b_ref, gamma_ref, out_ref, *, c8p):
    """One batch element of the fused attention block.

    x_ref    : (1, C, HW)      flattened image, f32 (residual path)
    w_ref    : (2*c8p + C, C)  stacked [Wq_pad; Wk_pad; Wv], bf16
    b_ref    : (2*c8p + C, 1)  stacked biases (padded rows are 0), f32
    gamma_ref: (1, 1)          scalar gamma in SMEM
    out_ref  : (1, C, HW)
    """
    x_f32 = x_ref[0]                             # (C, HW)  keep f32 for residual
    x_b = x_f32.astype(jnp.bfloat16)

    # Fused Q/K/V projection: one bf16 MXU matmul, f32 accumulation, one bias add.
    qkv = jnp.dot(w_ref[...], x_b, preferred_element_type=jnp.float32) + b_ref[...]
    q = qkv[:c8p, :]                             # (c8p, HW)  padded rows exactly 0
    k = qkv[c8p:2 * c8p, :]                      # (c8p, HW)  padded rows exactly 0
    v = qkv[2 * c8p:, :]                         # (C,   HW)

    # energy_t[j, i] = sum_c k[c, j] * q[c, i]  (== energy[i, j] of the module).
    # Contracting dim 0 of both operands -> no explicit .T materialization.
    energy_t = lax.dot_general(
        k.astype(jnp.bfloat16), q.astype(jnp.bfloat16),
        dimension_numbers=(((0,), (0,)), ((), ())),
        preferred_element_type=jnp.float32)      # (HW_key, HW_query)

    # Softmax over keys (axis 0), normalization deferred to the output.
    m = jnp.max(energy_t, axis=0, keepdims=True)          # (1, HWq)
    e = jnp.exp(energy_t - m)                              # (HWk, HWq)
    s = jnp.sum(e, axis=0, keepdims=True)                  # (1, HWq)

    # out_unnorm[c, i] = sum_j v[c, j] * e[j, i]  -- plain matmul, no transpose.
    out_un = jnp.dot(v.astype(jnp.bfloat16), e.astype(jnp.bfloat16),
                     preferred_element_type=jnp.float32)   # (C, HWq)

    inv = pl.reciprocal(s, approx=True)                    # (1, HWq), EUP
    gamma = gamma_ref[0, 0]
    out_ref[0] = (gamma * (out_un * inv) + x_f32).astype(out_ref.dtype)


def _round_up(x, m):
    return (x + m - 1) // m * m


def attention_block_pallas(x_nchw, params):
    """Fused AttentionBlock forward.  Input/output are NCHW (PyTorch layout)."""
    B, C, H, W = x_nchw.shape
    HW = H * W
    if C % 8 != 0:
        raise ValueError("channels must be a multiple of 8 (module uses channels // 8)")
    if HW % 128 != 0:
        raise ValueError("H*W must be a multiple of 128")

    wq, bq = params["wq"], params["bq"]
    wk, bk = params["wk"], params["bk"]
    wv, bv = params["wv"], params["bv"]

    c8 = wq.shape[0]
    c8p = _round_up(max(c8, 8), 8)               # sublane-aligned q/k row count
    ctot = 2 * c8p + C                           # multiple of 8

    # Stack [Wq_pad; Wk_pad; Wv] into one bf16 weight and one f32 bias column.
    # Zero-padded rows produce all-zero q/k rows -> contribute 0 to the energy.
    w_all = jnp.zeros((ctot, C), jnp.bfloat16)
    w_all = w_all.at[:c8, :].set(wq.astype(jnp.bfloat16))
    w_all = w_all.at[c8p:c8p + c8, :].set(wk.astype(jnp.bfloat16))
    w_all = w_all.at[2 * c8p:, :].set(wv.astype(jnp.bfloat16))

    b_all = jnp.zeros((ctot, 1), jnp.float32)
    b_all = b_all.at[:c8, 0].set(bq.astype(jnp.float32))
    b_all = b_all.at[c8p:c8p + c8, 0].set(bk.astype(jnp.float32))
    b_all = b_all.at[2 * c8p:, 0].set(bv.astype(jnp.float32))

    gamma_smem = jnp.asarray(params["gamma"], jnp.float32).reshape(1, 1)

    # NCHW -> (B, C, H*W) is a pure reshape (pixels on the 128-lane minor dim).
    xf = x_nchw.reshape(B, C, HW)

    flops = B * (2 * ctot * C * HW + 2 * c8p * HW * HW + 2 * C * HW * HW)
    transcendentals = B * (HW * HW + HW)
    bytes_accessed = 2 * B * C * HW * 4 + ctot * C * 2 + ctot * 4 + 4

    kernel = functools.partial(_attention_kernel, c8p=c8p)

    out = pl.pallas_call(
        kernel,
        out_shape=jax.ShapeDtypeStruct((B, C, HW), x_nchw.dtype),
        grid_spec=pltpu.PrefetchScalarGridSpec(
            num_scalar_prefetch=0,
            grid=(B,),
            in_specs=[
                pl.BlockSpec((1, C, HW), lambda b: (b, 0, 0)),      # image
                pl.BlockSpec((ctot, C), lambda b: (0, 0)),          # stacked W
                pl.BlockSpec((ctot, 1), lambda b: (0, 0)),          # stacked bias
                pl.BlockSpec(memory_space=pltpu.MemorySpace.SMEM),  # gamma
            ],
            out_specs=pl.BlockSpec((1, C, HW), lambda b: (b, 0, 0)),
        ),
        compiler_params=pltpu.CompilerParams(
            dimension_semantics=("parallel",),
            vmem_limit_bytes=32 * 1024 * 1024),
        cost_estimate=pl.CostEstimate(flops=flops,
                                      transcendentals=transcendentals,
                                      bytes_accessed=bytes_accessed),
    )(xf, w_all, b_all, gamma_smem)

    return out.reshape(B, C, H, W)


attention_block_forward = jax.jit(attention_block_pallas)


def init_attention_params(key, channels, dtype=jnp.float32):
    """Deterministic synthetic parameters matching nn.Conv2d(..., kernel_size=1)."""
    c8 = channels // 8
    assert c8 >= 1, "channels must be >= 8"
    kq, kk, kv, kb1, kb2, kb3 = jax.random.split(key, 6)
    scale = 0.05
    return {
        "wq": (scale * jax.random.normal(kq, (c8, channels))).astype(dtype),
        "bq": (scale * jax.random.normal(kb1, (c8,))).astype(dtype),
        "wk": (scale * jax.random.normal(kk, (c8, channels))).astype(dtype),
        "bk": (scale * jax.random.normal(kb2, (c8,))).astype(dtype),
        "wv": (scale * jax.random.normal(kv, (channels, channels))).astype(dtype),
        "bv": (scale * jax.random.normal(kb3, (channels,))).astype(dtype),
        # PyTorch initializes gamma to 0 (output == input).  Use a nonzero value
        # here so the attention path is actually exercised by the check.
        "gamma": jnp.asarray(0.8, dtype),
    }


def _reference_attention_block(x_nchw, params):
    """Pure-JAX f32 reference mirroring the PyTorch forward exactly."""
    B, C, H, W = x_nchw.shape
    HW = H * W
    hp = lax.Precision.HIGHEST
    xf = x_nchw.reshape(B, C, HW).astype(jnp.float32)
    q = jnp.einsum("oc,bci->boi", params["wq"], xf, precision=hp) + params["bq"][None, :, None]
    k = jnp.einsum("oc,bci->boi", params["wk"], xf, precision=hp) + params["bk"][None, :, None]
    v = jnp.einsum("oc,bci->boi", params["wv"], xf, precision=hp) + params["bv"][None, :, None]
    energy = jnp.einsum("bci,bcj->bij", q, k, precision=hp)          # (B, HW, HW)
    attn = jax.nn.softmax(energy, axis=-1)
    out = jnp.einsum("bcj,bij->bci", v, attn, precision=hp)          # (B, C, HW)
    y = params["gamma"] * out + xf
    return y.reshape(B, C, H, W).astype(x_nchw.dtype)


if __name__ == "__main__":
    key = jax.random.PRNGKey(0)
    k_x, k_p = jax.random.split(key)

    # channels must be >= 8 so that channels // 8 >= 1 (as the module requires).
    B, C, H, W = 2, 32, 16, 16
    x = jax.random.normal(k_x, (B, C, H, W), dtype=jnp.float32)
    params = init_attention_params(k_p, C)

    y = attention_block_forward(x, params)
    y = jax.block_until_ready(y)

    y_ref = _reference_attention_block(x, params)
    assert y.shape == (B, C, H, W)
    # Kernel uses bf16 MXU operands with f32 accumulation and an approx
    # reciprocal; tolerance is set accordingly vs. the full-f32 reference.
    assert jnp.allclose(y, y_ref, atol=2e-2, rtol=2e-2), "mismatch vs reference"

    print("KERNEL_OK")
</pallas_src>

<mosaic_0001>
module attributes {stable_mosaic.version = 11 : i64} {
  func.func @_attention_kernel(%arg0: i32, %arg1: memref<1x32x256xf32, #tpu.memory_space<vmem>>, %arg2: memref<48x32xbf16, #tpu.memory_space<vmem>>, %arg3: memref<48x1xf32, #tpu.memory_space<vmem>>, %arg4: memref<1x1xf32, #tpu.memory_space<smem>>, %arg5: memref<1x32x256xf32, #tpu.memory_space<vmem>>) attributes {dimension_semantics = [#tpu.dimension_semantics<parallel>], iteration_bounds = array<i64: 2>, scalar_prefetch = 0 : i64, scratch_operands = 0 : i64, tpu.core_type = #tpu.core_type<tc>, window_params = [{transform_indices = @transform_0, window_bounds = array<i64: 1, 32, 256>}, {pipeline_mode = #tpu.pipeline_mode<synchronous>, transform_indices = @transform_1, window_bounds = array<i64: 48, 32>}, {pipeline_mode = #tpu.pipeline_mode<synchronous>, transform_indices = @transform_2, window_bounds = array<i64: 48, 1>}, {transform_indices = @transform_3, window_bounds = array<i64: 1, 1>}, {transform_indices = @transform_4, window_bounds = array<i64: 1, 32, 256>}]} {
    %c0 = arith.constant 0 : index
    %c0_0 = arith.constant 0 : index
    %c0_1 = arith.constant 0 : index
    %0 = vector.load %arg1[%c0, %c0_0, %c0_1] : memref<1x32x256xf32, #tpu.memory_space<vmem>>, vector<1x32x256xf32>
    %1 = vector.shape_cast %0 : vector<1x32x256xf32> to vector<32x256xf32>
    %2 = arith.truncf %1 : vector<32x256xf32> to vector<32x256xbf16>
    %c0_2 = arith.constant 0 : index
    %c0_3 = arith.constant 0 : index
    %3 = vector.load %arg2[%c0_2, %c0_3] : memref<48x32xbf16, #tpu.memory_space<vmem>>, vector<48x32xbf16>
    %cst = arith.constant dense<0.000000e+00> : vector<48x256xf32>
    %4 = tpu.matmul %3, %2, %cst {dimension_numbers = #tpu.dot_dimension_numbers<[1], [0], [0], [1], [0, 0, 1, 1], [], []>} : vector<48x32xbf16>, vector<32x256xbf16>, vector<48x256xf32> -> vector<48x256xf32>
    %c0_4 = arith.constant 0 : index
    %c0_5 = arith.constant 0 : index
    %5 = vector.load %arg3[%c0_4, %c0_5] : memref<48x1xf32, #tpu.memory_space<vmem>>, vector<48x1xf32>
    %6 = vector.broadcast %5 : vector<48x1xf32> to vector<48x256xf32>
    %7 = arith.addf %4, %6 : vector<48x256xf32>
    %8 = vector.extract_strided_slice %7 {offsets = [0, 0], sizes = [8, 256], strides = [1, 1]} : vector<48x256xf32> to vector<8x256xf32>
    %9 = vector.extract_strided_slice %7 {offsets = [8, 0], sizes = [8, 256], strides = [1, 1]} : vector<48x256xf32> to vector<8x256xf32>
    %10 = vector.extract_strided_slice %7 {offsets = [16, 0], sizes = [32, 256], strides = [1, 1]} : vector<48x256xf32> to vector<32x256xf32>
    %11 = arith.truncf %9 : vector<8x256xf32> to vector<8x256xbf16>
    %12 = arith.truncf %8 : vector<8x256xf32> to vector<8x256xbf16>
    %cst_6 = arith.constant dense<0.000000e+00> : vector<256x256xf32>
    %13 = tpu.matmul %11, %12, %cst_6 {dimension_numbers = #tpu.dot_dimension_numbers<[0], [0], [1], [1], [0, 1, 1, 1], [], []>} : vector<8x256xbf16>, vector<8x256xbf16>, vector<256x256xf32> -> vector<256x256xf32>
    %cst_7 = arith.constant dense<0xFF800000> : vector<256xf32>
    %14 = vector.multi_reduction <maximumf>, %13, %cst_7 [0] : vector<256x256xf32> to vector<256xf32>
    %15 = vector.shape_cast %14 : vector<256xf32> to vector<1x256xf32>
    %16 = vector.broadcast %15 : vector<1x256xf32> to vector<256x256xf32>
    %17 = arith.subf %13, %16 : vector<256x256xf32>
    %18 = math.exp %17 : vector<256x256xf32>
    %cst_8 = arith.constant dense<0.000000e+00> : vector<256xf32>
    %19 = vector.multi_reduction <add>, %18, %cst_8 [0] : vector<256x256xf32> to vector<256xf32>
    %20 = vector.shape_cast %19 : vector<256xf32> to vector<1x256xf32>
    %21 = arith.truncf %10 : vector<32x256xf32> to vector<32x256xbf16>
    %22 = arith.truncf %18 : vector<256x256xf32> to vector<256x256xbf16>
    %cst_9 = arith.constant dense<0.000000e+00> : vector<32x256xf32>
    %23 = tpu.matmul %21, %22, %cst_9 {dimension_numbers = #tpu.dot_dimension_numbers<[1], [0], [0], [1], [0, 0, 1, 1], [], []>} : vector<32x256xbf16>, vector<256x256xbf16>, vector<32x256xf32> -> vector<32x256xf32>
    %24 = tpu.reciprocal %20 {approx = true} : vector<1x256xf32> -> vector<1x256xf32>
    %c0_10 = arith.constant 0 : index
    %c0_11 = arith.constant 0 : index
    %25 = memref.load %arg4[%c0_10, %c0_11] : memref<1x1xf32, #tpu.memory_space<smem>>
    %26 = vector.broadcast %24 : vector<1x256xf32> to vector<32x256xf32>
    %27 = arith.mulf %23, %26 : vector<32x256xf32>
    %28 = vector.broadcast %25 : f32 to vector<32x256xf32>
    %29 = arith.mulf %28, %27 : vector<32x256xf32>
    %30 = arith.addf %29, %1 : vector<32x256xf32>
    %c0_12 = arith.constant 0 : index
    %c0_13 = arith.constant 0 : index
    %c0_14 = arith.constant 0 : index
    %31 = vector.load %arg5[%c0_12, %c0_13, %c0_14] : memref<1x32x256xf32, #tpu.memory_space<vmem>>, vector<1x32x256xf32>
    %32 = vector.shape_cast %31 : vector<1x32x256xf32> to vector<32x256xf32>
    %33 = vector.shape_cast %30 : vector<32x256xf32> to vector<1x32x256xf32>
    tpu.vector_store %arg5[%c0_12, %c0_13, %c0_14], %33 {strides = array<i32>} : memref<1x32x256xf32, #tpu.memory_space<vmem>>, vector<1x32x256xf32>,
    return
  }
  func.func @transform_0(%arg0: i32) -> (i32, i32, i32) {
    %c0_i32 = arith.constant 0 : i32
    %c0_i32_0 = arith.constant 0 : i32
    %c0_i32_1 = arith.constant 0 : i32
    return %arg0, %c0_i32, %c0_i32_0 : i32, i32, i32
  }
  func.func @transform_1(%arg0: i32) -> (i32, i32) {
    %c0_i32 = arith.constant 0 : i32
    %c0_i32_0 = arith.constant 0 : i32
    %c0_i32_1 = arith.constant 0 : i32
    return %c0_i32, %c0_i32_0 : i32, i32
  }
  func.func @transform_2(%arg0: i32) -> (i32, i32) {
    %c0_i32 = arith.constant 0 : i32
    %c0_i32_0 = arith.constant 0 : i32
    %c0_i32_1 = arith.constant 0 : i32
    return %c0_i32, %c0_i32_0 : i32, i32
  }
  func.func @transform_3(%arg0: i32) -> (i32, i32) {
    %c0_i32 = arith.constant 0 : i32
    %c0_i32_0 = arith.constant 0 : i32
    %c0_i32_1 = arith.constant 0 : i32
    return %c0_i32, %c0_i32_0 : i32, i32
  }
  func.func @transform_4(%arg0: i32) -> (i32, i32, i32) {
    %c0_i32 = arith.constant 0 : i32
    %c0_i32_0 = arith.constant 0 : i32
    %c0_i32_1 = arith.constant 0 : i32
    return %arg0, %c0_i32, %c0_i32_0 : i32, i32, i32
  }
}

</mosaic_0001>

<bundles_post_ra>
// kernel: attention_block_pallas.1
= control target key start
LH: loop header
LB: loop body
LE: loop exit
PB: predicated region body
PF: predicated region fallthrough
CT: control target
= control target key end

     0   :  { %s1373_s17 = smov 0   ;;  %s2025_s0 = inlined_call_operand.vmem [shape: f32[2,32,256], index: 0, kind: input, shape index: {}]   ;;  %s2026_s1 = inlined_call_operand.vmem [shape: bf16[48,32], index: 1, kind: input, shape index: {}]   ;;  %s2027_s2 = inlined_call_operand.vmem [shape: f32[48,1], index: 2, kind: input, shape index: {}]   ;;  %s2028_s3 = inlined_call_operand.<no memory space> [shape: f32[1,1], index: 3, kind: input, shape index: {}]   ;;  %s2029_s4 = inlined_call_operand.vmem [shape: f32[2,32,256], index: 4, kind: output, shape index: {}]  }
   0x1   :  { %9 = sst [smem:[#allocation2]] %s2028_s3 }
   0x2 LB: > { %s1147_s18 = sadd.s32 4294967295, %s1342_s17   ;;  %p1151_p0 = scmp.ge.s32.totalorder %s1342_s17, 1  ;;  %s1342_s17 = sphi %s1373_s17, %s15_s17  }
   0x3   : > { %p163_p1 = scmp.lt.s32.totalorder %s1342_s17, 3 }
   0x5   : > { %p164_p2 = pnand %p1151_p0, %p163_p1 }
   0x7   : > { %167 = sbr.rel (%p164_p2) target bundleno = 1003 (0x3eb), region = 36 }
   0xc   : > { %p189_p3 = scmp.lt.s32.totalorder %s1147_s18, 1  ;;  %v1344_v0 = vmov 0   ;;  %v219_v1 = vld [vmem:[%s2027_s2 + $0x8] sm:$0xff]  ;;  %v218_v2 = vld [vmem:[%s2027_s2] sm:$0xff]  ;;  %v220_v14 = vld [vmem:[%s2027_s2 + $0x10] sm:$0xff]  ;;  %vm269_vm0 = vcmask 261120  }
   0xd   : > { %311 = vmatprep.mubr.bf16.mxu0 %v1344_v0  ;;  %1192 = vset.pattern.permute.xlu0 %v1344_v0  ;;  %v1193_v16 = vld [vmem:[%s2026_s1] sm:$0xff]   ;;  %v221_v17 = vld [vmem:[%s2027_s2 + $0x18] sm:$0xff]  ;;  %v1194_v19 = vld [vmem:[%s2026_s1 + $0x8] sm:$0xff]   ;;  %vm427_vm1 = vcmask 1043456   ;;  %vm378_vm2 = vcmask 64512   ;;  %s1058_s14 = sld [smem:[#allocation2]] }
   0xe   : > { %s2104_s18 = smov (!%p189_p3, %s1147_s18), 1  ;;  %466 = vmatprep.mubr.bf16.mxu1 %v1344_v0  ;;  %231 = vperm.xlu0 %1192, %v219_v1   ;;  %v222_v18 = vld [vmem:[%s2027_s2 + $0x20] sm:$0xff]  ;;  %v223_v20 = vld [vmem:[%s2027_s2 + $0x28] sm:$0xff]  ;;  %v1195_v21 = vld [vmem:[%s2026_s1 + $0x10] sm:$0xff]  }
   0xf   : > { %s1181_s20 = sshll.u32 %s2104_s18, 6 }
  0x10   : > { %s1395_s23 = scalar_lea.vmem %s2025_s0, %s1181_s20  ;;  %s2004_s3 = scalar_lea.vmem %s2029_s4, %s1181_s20 }
  0x11   : > { %v205_v3 = vld [vmem:[%s1395_s23 + $0x28] sm:$0xff]  ;;  %v207_v4 = vld [vmem:[%s1395_s23 + $0x38] sm:$0xff]  ;;  %v204_v5 = vld [vmem:[%s1395_s23 + $0x20] sm:$0xff] }
  0x12   : > { %v211_v6 = vpack.c.bf16 %v207_v4, %v205_v3  ;;  %v206_v7 = vld [vmem:[%s1395_s23 + $0x30] sm:$0xff]  ;;  %v201_v8 = vld [vmem:[%s1395_s23 + $0x8] sm:$0xff]  ;;  %v203_v9 = vld [vmem:[%s1395_s23 + $0x18] sm:$0xff]  ;;  %226 = vperm.xlu0 %1192, %v218_v2  }
  0x13   : > { %v210_v10 = vpack.c.bf16 %v206_v7, %v204_v5  ;;  %v209_v11 = vpack.c.bf16 %v203_v9, %v201_v8  ;;  %v200_v12 = vld [vmem:[%s1395_s23] sm:$0xff]  ;;  %v202_v13 = vld [vmem:[%s1395_s23 + $0x10] sm:$0xff] }
  0x14   : > { %291 = vmatprep.subr.bf16.mxu0 %v211_v6  ;;  %v208_v15 = vpack.c.bf16 %v202_v13, %v200_v12 }
  0x15   : > { %292 = vmatpush1.bf16.msra.mxu0 %v210_v10 }
  0x16   : > { %293 = vmatprep.subr.bf16.mxu0 %v209_v11  ;;  %236 = vperm.xlu0 %1192, %v220_v14  }
  0x19   : > { %294 = vmatpush1.bf16.msra.mxu0 %v208_v15 }
  0x1a   : > { %241 = vperm.xlu0 %1192, %v221_v17  }
  0x1c   : > { %1159 = vmatmul.mubr.msk.bf16.vlgmr.msra.gmra.mxu0 %vm269_vm0, %v1193_v16 }
  0x1d   : > { %321 = vmatprep.mubr.bf16.mxu0 %v1344_v0 }
  0x1e   : > { %246 = vperm.xlu0 %1192, %v222_v18  }
  0x22   : > { %251 = vperm.xlu0 %1192, %v223_v20  }
  0x24   : > { %1160 = vmatmul.mubr.msk.bf16.gmra.mxu0 %vm269_vm0, %v1194_v19 }
  0x25   : > { %331 = vmatprep.mubr.bf16.mxu0 %v1344_v0 }
  0x2c   : > { %1161 = vmatmul.mubr.msk.bf16.gmra.mxu0 %vm269_vm0, %v1195_v21 }
  0x89   : > { %v232_v22 = vpop.permute.xlu0 %231 }
  0x8d   : > { %v227_v23 = vpop.permute.xlu0 %226 }
  0x91   : > { %v237_v32 = vpop.permute.xlu0 %236 }
  0x95   : > { %v242_v38 = vpop.permute.xlu0 %241 }
  0xdc   : > { %v313_v24 = vpop.f32.mrf.mxu0 }
  0xdd   : > { %v314_v25 = vadd.f32 %v313_v24, %v227_v23 }
  0xde   : > { %v315_v26 = vpop.f32.mrf.mxu0 }
  0xdf   : > { %v344_v27 = vpack.c.bf16 %v314_v25, %v314_v25  ;;  %v316_v28 = vadd.f32 %v315_v26, %v227_v23 }
  0xe0   : > { %v317_v29 = vpop.f32.mrf.mxu0 }
  0xe1   : > { %v345_v30 = vpack.c.bf16 %v316_v28, %v316_v28  ;;  %v318_v31 = vadd.f32 %v317_v29, %v232_v22  ;;  %v429_v34 = vsel %vm427_vm1, %v344_v27, 0 }
  0xe2   : > { %v319_v33 = vpop.f32.mrf.mxu0 }
  0xe3   : > { %1162 = vmatprep.subr.msk.bf16.mxu1 %vm427_vm1, %v345_v30  ;;  %v342_v35 = vpack.c.bf16 %v318_v31, %v318_v31  ;;  %v320_v47 = vadd.f32 %v319_v33, %v232_v22 }
  0xe4   : > { %v323_v36 = vpop.f32.mrf.mxu0  ;;  %449 = vmatpush1.bf16.msra.mxu1 %v429_v34 }
  0xe5   : > { %346 = vxpose.xlu1.c.b16.start.end [1/1] (short) %v342_v35, 128  ;;  %v1431_v40 = vadd.f32 %v323_v36, %v237_v32  ;;  %v343_v48 = vpack.c.bf16 %v320_v47, %v320_v47 }
  0xe6   : > { %v325_v37 = vpop.f32.mrf.mxu0 }
  0xe7   : > { %2053 = vst [vmem:[#allocation3_spill] sm:$0xff] %v1431_v40  ;;  %v326_v43 = vadd.f32 %v325_v37, %v237_v32 }
  0xe8   : > { %v327_v39 = vpop.f32.mrf.mxu0 }
  0xe9   : > { %v1433_v41 = vadd.f32 %v327_v39, %v242_v38 }
  0xea   : > { %v329_v42 = vpop.f32.mrf.mxu0 }
  0xeb   : > { %2054 = vst [vmem:[#allocation4_spill] sm:$0xff] %v1433_v41  ;;  %v330_v45 = vadd.f32 %v329_v42, %v242_v38 }
  0xed   : > { %v968_v46 = vpack.c.bf16 %v330_v45, %v326_v43 }
  0xef   : > { %1035 = vmatprep.mubr.bf16.mxu0 %v968_v46 }
 0x102   : > { %362 = vxpose.xlu1.c.b16.start.end [1/1] (short) %v343_v48, 128 }
 0x147   : > { %v354_v49 = vpop.trf.xlu1 }
 0x148   : > { %1163 = vmatmul.mubr.msk.bf16.vlgmr.msra.gmra.mxu1 %vm378_vm2, %v354_v49 }
 0x149   : > { %476 = vmatprep.mubr.bf16.mxu1 %v1344_v0 }
 0x14b   : > { %v355_v50 = vpop.trf.xlu1 }
 0x14f   : > { %v356_v51 = vpop.trf.xlu1 }
 0x150   : > { %1164 = vmatmul.mubr.msk.bf16.gmra.mxu1 %vm378_vm2, %v355_v50 }
 0x151   : > { %486 = vmatprep.mubr.bf16.mxu1 %v1344_v0 }
 0x153   : > { %v357_v52 = vpop.trf.xlu1 }
 0x157   : > { %v358_v53 = vpop.trf.xlu1 }
 0x158   : > { %1165 = vmatmul.mubr.msk.bf16.gmra.mxu1 %vm378_vm2, %v356_v51 }
 0x159   : > { %496 = vmatprep.mubr.bf16.mxu1 %v1344_v0 }
 0x15b   : > { %v359_v54 = vpop.trf.xlu1 }
 0x15f   : > { %v360_v55 = vpop.trf.xlu1 }
 0x160   : > { %1166 = vmatmul.mubr.msk.bf16.gmra.mxu1 %vm378_vm2, %v357_v52 }
 0x161   : > { %506 = vmatprep.mubr.bf16.mxu1 %v1344_v0 }
 0x163   : > { %v361_v56 = vpop.trf.xlu1 }
 0x167   : > { %v370_v57 = vpop.trf.xlu1 }
 0x168   : > { %1167 = vmatmul.mubr.msk.bf16.gmra.mxu1 %vm378_vm2, %v358_v53 }
 0x169   : > { %516 = vmatprep.mubr.bf16.mxu1 %v1344_v0 }
 0x16b   : > { %v371_v58 = vpop.trf.xlu1 }
 0x16f   : > { %v372_v59 = vpop.trf.xlu1 }
 0x170   : > { %1168 = vmatmul.mubr.msk.bf16.gmra.mxu1 %vm378_vm2, %v359_v54 }
 0x171   : > { %526 = vmatprep.mubr.bf16.mxu1 %v1344_v0 }
 0x173   : > { %v373_v60 = vpop.trf.xlu1 }
 0x177   : > { %v374_v61 = vpop.trf.xlu1 }
 0x178   : > { %1169 = vmatmul.mubr.msk.bf16.gmra.mxu1 %vm378_vm2, %v360_v55 }
 0x179   : > { %536 = vmatprep.mubr.bf16.mxu1 %v1344_v0 }
 0x17b   : > { %v375_v62 = vpop.trf.xlu1 }
 0x17f   : > { %v376_v63 = vpop.trf.xlu1 }
 0x180   : > { %1170 = vmatmul.mubr.msk.bf16.gmra.mxu1 %vm378_vm2, %v361_v56 }
 0x181   : > { %546 = vmatprep.mubr.bf16.mxu1 %v1344_v0 }
 0x183   : > { %v377_v1 = vpop.trf.xlu1 }
 0x188   : > { %1171 = vmatmul.mubr.msk.bf16.gmra.mxu1 %vm378_vm2, %v370_v57 }
 0x189   : > { %556 = vmatprep.mubr.bf16.mxu1 %v1344_v0 }
 0x190   : > { %1172 = vmatmul.mubr.msk.bf16.gmra.mxu1 %vm378_vm2, %v371_v58 }
 0x191   : > { %566 = vmatprep.mubr.bf16.mxu1 %v1344_v0 }
 0x198   : > { %1173 = vmatmul.mubr.msk.bf16.gmra.mxu1 %vm378_vm2, %v372_v59 }
 0x199   : > { %576 = vmatprep.mubr.bf16.mxu1 %v1344_v0 }
 0x1a0   : > { %1174 = vmatmul.mubr.msk.bf16.gmra.mxu1 %vm378_vm2, %v373_v60 }
 0x1a1   : > { %586 = vmatprep.mubr.bf16.mxu1 %v1344_v0 }
 0x1a8   : > { %1175 = vmatmul.mubr.msk.bf16.gmra.mxu1 %vm378_vm2, %v374_v61 }
 0x1a9   : > { %596 = vmatprep.mubr.bf16.mxu1 %v1344_v0 }
 0x1b0   : > { %1176 = vmatmul.mubr.msk.bf16.gmra.mxu1 %vm378_vm2, %v375_v62 }
 0x1b1   : > { %606 = vmatprep.mubr.bf16.mxu1 %v1344_v0 }
 0x1b8   : > { %1177 = vmatmul.mubr.msk.bf16.gmra.mxu1 %vm378_vm2, %v376_v63 }
 0x1b9   : > { %616 = vmatprep.mubr.bf16.mxu1 %v1344_v0 }
 0x1c0   : > { %1178 = vmatmul.mubr.msk.bf16.gmra.mxu1 %vm378_vm2, %v377_v1 }
 0x208   : > { %v1468_v2 = vpop.f32.mrf.mxu1 }
 0x20a   : > { %v1470_v3 = vpop.f32.mrf.mxu1 }
 0x20c   : > { %v1472_v4 = vpop.f32.mrf.mxu1 }
 0x20e   : > { %v1474_v5 = vpop.f32.mrf.mxu1 }
 0x210   : > { %v1476_v6 = vpop.f32.mrf.mxu1 }
 0x211   : > { %v627_v53 = vmax.f32 %v1468_v2, %v1476_v6 }
 0x212   : > { %v1478_v7 = vpop.f32.mrf.mxu1 }
 0x214   : > { %v1480_v8 = vpop.f32.mrf.mxu1 }
 0x215   : > { %v628_v54 = vmax.f32 %v1472_v4, %v1480_v8 }
 0x216   : > { %v1482_v9 = vpop.f32.mrf.mxu1 }
 0x217   : > { %2055 = vst [vmem:[#allocation5_spill] sm:$0xff] %v1482_v9 }
 0x218   : > { %v1484_v0 = vpop.f32.mrf.mxu1 }
 0x219   : > { %v629_v56 = vmax.f32 %v627_v53, %v1484_v0 }
 0x21a   : > { %v1486_v10 = vpop.f32.mrf.mxu1 }
 0x21c   : > { %v1488_v11 = vpop.f32.mrf.mxu1 }
 0x21d   : > { %v630_v57 = vmax.f32 %v628_v54, %v1488_v11 }
 0x21e   : > { %v1490_v12 = vpop.f32.mrf.mxu1 }
 0x21f   : > { %2056 = vst [vmem:[#allocation6_spill] sm:$0xff] %v1490_v12 }
 0x220   : > { %v1492_v13 = vpop.f32.mrf.mxu1 }
 0x221   : > { %v631_v59 = vmax.f32 %v629_v56, %v1492_v13 }
 0x222   : > { %v1494_v14 = vpop.f32.mrf.mxu1 }
 0x224   : > { %v1496_v15 = vpop.f32.mrf.mxu1 }
 0x225   : > { %v632_v60 = vmax.f32 %v630_v57, %v1496_v15 }
 0x226   : > { %v1498_v16 = vpop.f32.mrf.mxu1 }
 0x227   : > { %2057 = vst [vmem:[#allocation7_spill] sm:$0xff] %v1498_v16 }
 0x228   : > { %v1500_v17 = vpop.f32.mrf.mxu1 }
 0x229   : > { %2058 = vst [vmem:[#allocation8_spill] sm:$0xff] %v1500_v17  ;;  %v633_v62 = vmax.f32 %v631_v59, %v1500_v17 }
 0x22a   : > { %v1502_v18 = vpop.f32.mrf.mxu1 }
 0x22b   : > { %2059 = vst [vmem:[#allocation9_spill] sm:$0xff] %v1502_v18 }
 0x22c   : > { %v1504_v19 = vpop.f32.mrf.mxu1 }
 0x22d   : > { %v634_v63 = vmax.f32 %v632_v60, %v1504_v19 }
 0x22e   : > { %v1506_v20 = vpop.f32.mrf.mxu1 }
 0x22f   : > { %2060 = vst [vmem:[#allocation10_spill] sm:$0xff] %v1506_v20 }
 0x230   : > { %v1508_v21 = vpop.f32.mrf.mxu1 }
 0x231   : > { %2061 = vst [vmem:[#allocation11_spill] sm:$0xff] %v1508_v21  ;;  %v635_v44 = vmax.f32 %v633_v62, %v1508_v21 }
 0x232   : > { %v1510_v22 = vpop.f32.mrf.mxu1 }
 0x234   : > { %v1512_v23 = vpop.f32.mrf.mxu1 }
 0x235   : > { %v636_v53 = vmax.f32 %v634_v63, %v1512_v23 }
 0x236   : > { %v1514_v24 = vpop.f32.mrf.mxu1 }
 0x238   : > { %v1516_v25 = vpop.f32.mrf.mxu1 }
 0x239   : > { %2062 = vst [vmem:[#allocation12_spill] sm:$0xff] %v1516_v25  ;;  %v637_v54 = vmax.f32 %v635_v44, %v1516_v25 }
 0x23a   : > { %v1518_v26 = vpop.f32.mrf.mxu1 }
 0x23c   : > { %v1520_v27 = vpop.f32.mrf.mxu1 }
 0x23d   : > { %v638_v56 = vmax.f32 %v636_v53, %v1520_v27  ;;  %v665_v53 = vmax.f32 %v1474_v5, %v1482_v9 }
 0x23e   : > { %v1522_v28 = vpop.f32.mrf.mxu1 }
 0x240   : > { %v1524_v29 = vpop.f32.mrf.mxu1 }
 0x241   : > { %v639_v57 = vmax.f32 %v637_v54, %v1524_v29 }
 0x242   : > { %v1526_v30 = vpop.f32.mrf.mxu1 }
 0x244   : > { %v1528_v31 = vpop.f32.mrf.mxu1 }
 0x245   : > { %2063 = vst [vmem:[#allocation13_spill] sm:$0xff] %v1528_v31  ;;  %v640_v59 = vmax.f32 %v638_v56, %v1528_v31 }
 0x246   : > { %v1530_v32 = vpop.f32.mrf.mxu1 }
 0x248   : > { %v1532_v33 = vpop.f32.mrf.mxu1 }
 0x249   : > { %v641_v60 = vmax.f32 %v639_v57, %v1532_v33  ;;  %v664_v57 = vmax.f32 %v1470_v3, %v1478_v7 }
 0x24a   : > { %v1534_v34 = vpop.f32.mrf.mxu1 }
 0x24c   : > { %v1536_v35 = vpop.f32.mrf.mxu1 }
 0x24d   : > { %v642_v62 = vmax.f32 %v640_v59, %v1536_v35  ;;  %v667_v59 = vmax.f32 %v665_v53, %v1490_v12 }
 0x24e   : > { %v1538_v36 = vpop.f32.mrf.mxu1 }
 0x24f   : > { %v669_v9 = vmax.f32 %v667_v59, %v1498_v16 }
 0x250   : > { %v1540_v37 = vpop.f32.mrf.mxu1 }
 0x251   : > { %2064 = vst [vmem:[#allocation14_spill] sm:$0xff] %v1540_v37  ;;  %v643_v63 = vmax.f32 %v641_v60, %v1540_v37  ;;  %v666_v37 = vmax.f32 %v664_v57, %v1486_v10  ;;  %v671_v53 = vmax.f32 %v669_v9, %v1506_v20 }
 0x252   : > { %v1542_v38 = vpop.f32.mrf.mxu1 }
 0x253   : > { %v673_v59 = vmax.f32 %v671_v53, %v1514_v24 }
 0x254   : > { %v1544_v39 = vpop.f32.mrf.mxu1 }
 0x255   : > { %2065 = vst [vmem:[#allocation15_spill] sm:$0xff] %v1544_v39  ;;  %v644_v44 = vmax.f32 %v642_v62, %v1544_v39  ;;  %v675_v9 = vmax.f32 %v673_v59, %v1522_v28 }
 0x256   : > { %v1546_v42 = vpop.f32.mrf.mxu1 }
 0x258   : > { %v1548_v43 = vpop.f32.mrf.mxu1 }
 0x259   : > { %2066 = vst [vmem:[#allocation16_spill] sm:$0xff] %v1548_v43  ;;  %v645_v54 = vmax.f32 %v643_v63, %v1548_v43  ;;  %v668_v43 = vmax.f32 %v666_v37, %v1494_v14 }
 0x25a   : > { %v1550_v45 = vpop.f32.mrf.mxu1 }
 0x25b   : > { %v670_v57 = vmax.f32 %v668_v43, %v1502_v18  ;;  %v677_v43 = vmax.f32 %v675_v9, %v1530_v32 }
 0x25c   : > { %v1552_v46 = vpop.f32.mrf.mxu1 }
 0x25d   : > { %2067 = vst [vmem:[#allocation17_spill] sm:$0xff] %v1552_v46  ;;  %v646_v56 = vmax.f32 %v644_v44, %v1552_v46  ;;  %v672_v37 = vmax.f32 %v670_v57, %v1510_v22 }
 0x25e   : > { %v1554_v47 = vpop.f32.mrf.mxu1 }
 0x25f   : > { %v674_v20 = vmax.f32 %v672_v37, %v1518_v26 }
 0x260   : > { %v1556_v48 = vpop.f32.mrf.mxu1 }
 0x261   : > { %v647_v60 = vmax.f32 %v645_v54, %v1556_v48  ;;  %v676_v53 = vmax.f32 %v674_v20, %v1526_v30 }
 0x262   : > { %v1558_v49 = vpop.f32.mrf.mxu1 }
 0x264   : > { %v1560_v50 = vpop.f32.mrf.mxu1 }
 0x265   : > { %v648_v62 = vmax.f32 %v646_v56, %v1560_v50 }
 0x266   : > { %v1562_v51 = vpop.f32.mrf.mxu1 }
 0x268   : > { %v1564_v52 = vpop.f32.mrf.mxu1 }
 0x269   : > { %v649_v63 = vmax.f32 %v647_v60, %v1564_v52 }
 0x26a   : > { %v1570_v55 = vpop.f32.mrf.mxu1 }
 0x26c   : > { %v1574_v58 = vpop.f32.mrf.mxu1 }
 0x26d   : > { %v650_v44 = vmax.f32 %v648_v62, %v1574_v58 }
 0x26e   : > { %v1578_v61 = vpop.f32.mrf.mxu1 }
 0x270   : > { %v1582_v1 = vpop.f32.mrf.mxu1 }
 0x271   : > { %v651_v54 = vmax.f32 %v649_v63, %v1582_v1 }
 0x272   : > { %v1586_v40 = vpop.f32.mrf.mxu1 }
 0x274   : > { %v1590_v41 = vpop.f32.mrf.mxu1 }
 0x275   : > { %v652_v56 = vmax.f32 %v650_v44, %v1590_v41 }
 0x276   : > { %v1594_v17 = vpop.f32.mrf.mxu1 }
 0x278   : > { %v1598_v21 = vpop.f32.mrf.mxu1 }
 0x279   : > { %2068 = vst [vmem:[#allocation18_spill] sm:$0xff] %v1598_v21  ;;  %v653_v60 = vmax.f32 %v651_v54, %v1598_v21  ;;  %v679_v54 = vmax.f32 %v677_v43, %v1538_v36 }
 0x27a   : > { %v1602_v25 = vpop.f32.mrf.mxu1 }
 0x27b   : > { %v681_v57 = vmax.f32 %v679_v54, %v1546_v42 }
 0x27c   : > { %v1608_v31 = vpop.f32.mrf.mxu1 }
 0x27d   : > { %2069 = vst [vmem:[#allocation19_spill] sm:$0xff] %v1608_v31  ;;  %v654_v62 = vmax.f32 %v652_v56, %v1608_v31  ;;  %v678_v31 = vmax.f32 %v676_v53, %v1534_v34 }
 0x27e   : > { %v1615_v39 = vpop.f32.mrf.mxu1 }
 0x27f   : > { %v680_v59 = vmax.f32 %v678_v31, %v1542_v38 }
 0x280   : > { %v1621_v46 = vpop.f32.mrf.mxu1 }
 0x281   : > { %v655_v63 = vmax.f32 %v653_v60, %v1621_v46  ;;  %v683_v60 = vmax.f32 %v681_v57, %v1554_v47  ;;  %v682_v37 = vmax.f32 %v680_v59, %v1550_v45 }
 0x282   : > { %v1627_v12 = vpop.f32.mrf.mxu1 }
 0x283   : > { %v685_v9 = vmax.f32 %v683_v60, %v1562_v51  ;;  %v684_v20 = vmax.f32 %v682_v37, %v1558_v49 }
 0x284   : > { %v1633_v16 = vpop.f32.mrf.mxu1 }
 0x285   : > { %v656_v44 = vmax.f32 %v654_v62, %v1633_v16  ;;  %v686_v53 = vmax.f32 %v684_v20, %v1570_v55 }
 0x287   : > { %v657_v18 = vmax.f32 %v655_v63, %v656_v44  ;;  %v687_v44 = vmax.f32 %v685_v9, %v1578_v61  ;;  %v688_v31 = vmax.f32 %v686_v53, %v1586_v40 }
 0x289   : > { %v658_v56 = vrot.slane %v657_v18, 4  ;;  %v689_v54 = vmax.f32 %v687_v44, %v1594_v17  ;;  %v690_v59 = vmax.f32 %v688_v31, %v1602_v25 }
 0x28b   : > { %v659_v21 = vmax.f32 %v657_v18, %v658_v56  ;;  %v1653_v18 = vpop.f32.mrf.mxu1  ;;  %v691_v56 = vmax.f32 %v689_v54, %v1615_v39  ;;  %v692_v60 = vmax.f32 %v690_v59, %v1627_v12 }
 0x28d   : > { %v660_v62 = vrot.slane %v659_v21, 2 }
 0x28f   : > { %v661_v63 = vmax.f32 %v659_v21, %v660_v62  ;;  %v693_v21 = vmax.f32 %v691_v56, %v1653_v18 }
 0x291   : > { %v662_v43 = vrot.slane %v661_v63, 1  ;;  %v694_v20 = vmax.f32 %v692_v60, %v693_v21 }
 0x293   : > { %v1657_v57 = vmax.f32 %v661_v63, %v662_v43  ;;  %v695_v31 = vrot.slane %v694_v20, 4 }
 0x295   : > { %v701_v62 = vsub.f32 %v1468_v2, %v1657_v57  ;;  %v703_v37 = vsub.f32 %v1472_v4, %v1657_v57  ;;  %v705_v9 = vsub.f32 %v1476_v6, %v1657_v57  ;;  %v707_v63 = vsub.f32 %v1480_v8, %v1657_v57 }
 0x296   : > { %v709_v53 = vsub.f32 %v1484_v0, %v1657_v57  ;;  %v711_v2 = vsub.f32 %v1488_v11, %v1657_v57  ;;  %v713_v6 = vsub.f32 %v1492_v13, %v1657_v57  ;;  %v696_v59 = vmax.f32 %v694_v20, %v695_v31  ;;  %v2070_v0 = vld [vmem:[#allocation8_spill] sm:$0xff] }
 0x297   : > { %v765_v44 = vmul.f32 1.442695, %v701_v62  ;;  %v769_v43 = vmul.f32 1.442695, %v703_v37  ;;  %v773_v54 = vmul.f32 1.442695, %v705_v9  ;;  %v715_v8 = vsub.f32 %v1496_v15, %v1657_v57 }
 0x298   : > { %v777_v4 = vmul.f32 1.442695, %v707_v63  ;;  %v781_v56 = vmul.f32 1.442695, %v709_v53  ;;  %v785_v21 = vmul.f32 1.442695, %v711_v2  ;;  %v717_v60 = vsub.f32 %v2070_v0, %v1657_v57 }
 0x299   : > { %1196 = vpow2.f32 %v765_v44  ;;  %v789_v62 = vmul.f32 1.442695, %v713_v6  ;;  %v719_v11 = vsub.f32 %v1504_v19, %v1657_v57  ;;  %v697_v37 = vrot.slane %v696_v59, 2  ;;  %v2071_v9 = vld [vmem:[#allocation11_spill] sm:$0xff]  ;;  %v2072_v15 = vld [vmem:[#allocation12_spill] sm:$0xff] }
 0x29a   : > { %1198 = vpow2.f32 %v769_v43  ;;  %v721_v13 = vsub.f32 %v2071_v9, %v1657_v57  ;;  %v793_v63 = vmul.f32 1.442695, %v715_v8  ;;  %v723_v20 = vsub.f32 %v1512_v23, %v1657_v57 }
 0x29b   : > { %1200 = vpow2.f32 %v773_v54  ;;  %v725_v44 = vsub.f32 %v2072_v15, %v1657_v57  ;;  %v797_v43 = vmul.f32 1.442695, %v717_v60  ;;  %v727_v53 = vsub.f32 %v1520_v27, %v1657_v57 }
 0x29c   : > { %1202 = vpow2.f32 %v777_v4  ;;  %v801_v54 = vmul.f32 1.442695, %v719_v11  ;;  %v698_v31 = vmax.f32 %v696_v59, %v697_v37  ;;  %v729_v2 = vsub.f32 %v1524_v29, %v1657_v57 }
 0x29d   : > { %1204 = vpow2.f32 %v781_v56  ;;  %v805_v4 = vmul.f32 1.442695, %v721_v13  ;;  %v745_v23 = vsub.f32 %v1556_v48, %v1657_v57  ;;  %v809_v56 = vmul.f32 1.442695, %v723_v20 }
 0x29e   : > { %1206 = vpow2.f32 %v785_v21  ;;  %v747_v8 = vsub.f32 %v1560_v50, %v1657_v57  ;;  %v813_v27 = vmul.f32 1.442695, %v725_v44  ;;  %v749_v29 = vsub.f32 %v1564_v52, %v1657_v57 }
 0x29f   : > { %1208 = vpow2.f32 %v789_v62  ;;  %v817_v0 = vmul.f32 1.442695, %v727_v53  ;;  %v699_v60 = vrot.slane %v698_v31, 1  ;;  %v751_v48 = vsub.f32 %v1574_v58, %v1657_v57  ;;  %v2074_v58 = vld [vmem:[#allocation13_spill] sm:$0xff] }
 0x2a0   : > { %1210 = vpow2.f32 %v793_v63  ;;  %v821_v62 = vmul.f32 1.442695, %v729_v2  ;;  %v753_v37 = vsub.f32 %v1582_v1, %v1657_v57  ;;  %v853_v9 = vmul.f32 1.442695, %v745_v23  ;;  %v2075_v23 = vld [vmem:[#allocation14_spill] sm:$0xff] }
 0x2a1   : > { %1212 = vpow2.f32 %v797_v43  ;;  %v755_v52 = vsub.f32 %v1590_v41, %v1657_v57  ;;  %v857_v13 = vmul.f32 1.442695, %v747_v8  ;;  %v731_v15 = vsub.f32 %v2074_v58, %v1657_v57 }
 0x2a2   : > { %1214 = vpow2.f32 %v801_v54  ;;  %v861_v44 = vmul.f32 1.442695, %v749_v29  ;;  %v1720_v43 = vmax.f32 %v698_v31, %v699_v60  ;;  %v733_v1 = vsub.f32 %v1532_v33, %v1657_v57 }
 0x2a3   : > { %1216 = vpow2.f32 %v805_v4  ;;  %v865_v53 = vmul.f32 1.442695, %v751_v48  ;;  %v735_v2 = vsub.f32 %v1536_v35, %v1657_v57  ;;  %v869_v4 = vmul.f32 1.442695, %v753_v37  ;;  %v2076_v48 = vld [vmem:[#allocation15_spill] sm:$0xff] }
 0x2a4   : > { %1218 = vpow2.f32 %v809_v56  ;;  %v737_v56 = vsub.f32 %v2075_v23, %v1657_v57  ;;  %v873_v31 = vmul.f32 1.442695, %v755_v52  ;;  %v825_v33 = vmul.f32 1.442695, %v731_v15 }
 0x2a5   : > { %1220 = vpow2.f32 %v813_v27  ;;  %v829_v29 = vmul.f32 1.442695, %v733_v1 }
 0x2a6   : > { %v1690_v19 = vpop.eup %1196  ;;  %1222 = vpow2.f32 %v817_v0  ;;  %v704_v0 = vsub.f32 %v1474_v5, %v1720_v43  ;;  %v837_v37 = vmul.f32 1.442695, %v737_v56 }
 0x2a7   : > { %v1694_v6 = vpop.eup %1198  ;;  %1224 = vpow2.f32 %v821_v62  ;;  %v739_v62 = vsub.f32 %v2076_v48, %v1657_v57 }
 0x2a8   : > { %2073 = vst [vmem:[#allocation8_spill] sm:$0xff] %v1694_v6  ;;  %v893_v59 = vadd.f32 %v1694_v6, %v1690_v19  ;;  %v1702_v21 = vpop.eup %1200  ;;  %1226 = vpow2.f32 %v853_v9 }
 0x2a9   : > { %v1709_v11 = vpop.eup %1202  ;;  %1228 = vpow2.f32 %v857_v13  ;;  %v2077_v13 = vld [vmem:[#allocation16_spill] sm:$0xff] }
 0x2aa   : > { %v894_v50 = vadd.f32 %v1702_v21, %v893_v59  ;;  %v1716_v20 = vpop.eup %1204  ;;  %1230 = vpow2.f32 %v861_v44  ;;  %v702_v59 = vsub.f32 %v1470_v3, %v1720_v43  ;;  %v706_v3 = vsub.f32 %v1478_v7, %v1720_v43  ;;  %v2078_v44 = vld [vmem:[#allocation5_spill] sm:$0xff] }
 0x2ab   : > { %v1725_v54 = vpop.eup %1206  ;;  %1232 = vpow2.f32 %v865_v53  ;;  %v708_v1 = vsub.f32 %v2078_v44, %v1720_v43  ;;  %v771_v53 = vmul.f32 1.442695, %v704_v0  ;;  %v2079_v7 = vld [vmem:[#allocation17_spill] sm:$0xff] }
 0x2ac   : > { %v895_v63 = vadd.f32 %v1709_v11, %v894_v50  ;;  %v1732_v27 = vpop.eup %1208  ;;  %v833_v50 = vmul.f32 1.442695, %v735_v2  ;;  %1234 = vpow2.f32 %v869_v4  ;;  %v767_v5 = vmul.f32 1.442695, %v702_v59 }
 0x2ad   : > { %v1739_v60 = vpop.eup %1210  ;;  %1236 = vpow2.f32 %v873_v31  ;;  %v743_v2 = vsub.f32 %v2079_v7, %v1657_v57  ;;  %v841_v4 = vmul.f32 1.442695, %v739_v62  ;;  %v710_v31 = vsub.f32 %v1486_v10, %v1720_v43 }
 0x2ae   : > { %v896_v41 = vadd.f32 %v1716_v20, %v895_v63  ;;  %v1746_v52 = vpop.eup %1212  ;;  %v741_v63 = vsub.f32 %v2077_v13, %v1657_v57  ;;  %1238 = vpow2.f32 %v825_v33  ;;  %v714_v62 = vsub.f32 %v1494_v14, %v1720_v43 }
 0x2af   : > { %v1750_v58 = vpop.eup %1214  ;;  %1240 = vpow2.f32 %v829_v29  ;;  %v2080_v29 = vld [vmem:[#allocation6_spill] sm:$0xff]  ;;  %v849_v10 = vmul.f32 1.442695, %v743_v2  ;;  %v783_v44 = vmul.f32 1.442695, %v710_v31  ;;  %v726_v14 = vsub.f32 %v1518_v26, %v1720_v43 }
 0x2b0   : > { %v897_v8 = vadd.f32 %v1725_v54, %v896_v41  ;;  %v1755_v41 = vpop.eup %1216  ;;  %1242 = vpow2.f32 %v833_v50  ;;  %v845_v59 = vmul.f32 1.442695, %v741_v63  ;;  %v779_v50 = vmul.f32 1.442695, %v708_v1 }
 0x2b1   : > { %v1759_v23 = vpop.eup %1218  ;;  %1244 = vpow2.f32 %v837_v37  ;;  %v728_v1 = vsub.f32 %v1522_v28, %v1720_v43  ;;  %v732_v26 = vsub.f32 %v1530_v32, %v1720_v43 }
 0x2b2   : > { %v898_v35 = vadd.f32 %v1732_v27, %v897_v8  ;;  %v775_v8 = vmul.f32 1.442695, %v706_v3  ;;  %v1764_v33 = vpop.eup %1220  ;;  %1246 = vpow2.f32 %v767_v5  ;;  %v2082_v5 = vld [vmem:[#allocation9_spill] sm:$0xff] }
 0x2b3   : > { %v1768_v0 = vpop.eup %1222  ;;  %1248 = vpow2.f32 %v771_v53 }
 0x2b4   : > { %v899_v9 = vadd.f32 %v1739_v60, %v898_v35  ;;  %v712_v35 = vsub.f32 %v2080_v29, %v1720_v43  ;;  %v1773_v37 = vpop.eup %1224  ;;  %1250 = vpow2.f32 %v841_v4 }
 0x2b5   : > { %v1777_v13 = vpop.eup %1226  ;;  %1252 = vpow2.f32 %v775_v8 }
 0x2b6   : > { %v900_v15 = vadd.f32 %v1746_v52, %v899_v9  ;;  %v2081_v9 = vld [vmem:[#allocation7_spill] sm:$0xff]  ;;  %v1782_v7 = vpop.eup %1228  ;;  %1254 = vpow2.f32 %v845_v59  ;;  %v787_v53 = vmul.f32 1.442695, %v712_v35  ;;  %v730_v59 = vsub.f32 %v1526_v30, %v1720_v43 }
 0x2b7   : > { %v716_v3 = vsub.f32 %v2081_v9, %v1720_v43  ;;  %v1788_v2 = vpop.eup %1230  ;;  %1256 = vpow2.f32 %v779_v50  ;;  %v815_v30 = vmul.f32 1.442695, %v726_v14 }
 0x2b8   : > { %v901_v56 = vadd.f32 %v1750_v58, %v900_v15  ;;  %v718_v15 = vsub.f32 %v2082_v5, %v1720_v43  ;;  %v1793_v31 = vpop.eup %1232  ;;  %1258 = vpow2.f32 %v849_v10  ;;  %v2083_v10 = vld [vmem:[#allocation10_spill] sm:$0xff] }
 0x2b9   : > { %v795_v28 = vmul.f32 1.442695, %v716_v3  ;;  %v1799_v29 = vpop.eup %1234  ;;  %1260 = vpow2.f32 %v783_v44  ;;  %v720_v9 = vsub.f32 %v2083_v10, %v1720_v43  ;;  %v819_v3 = vmul.f32 1.442695, %v728_v1 }
 0x2ba   : > { %v902_v48 = vadd.f32 %v1755_v41, %v901_v56  ;;  %v791_v56 = vmul.f32 1.442695, %v714_v62  ;;  %v1804_v50 = vpop.eup %1236  ;;  %1262 = vpow2.f32 %v787_v53  ;;  %v722_v44 = vsub.f32 %v1510_v22, %v1720_v43 }
 0x2bb   : > { %v724_v53 = vsub.f32 %v1514_v24, %v1720_v43  ;;  %v803_v62 = vmul.f32 1.442695, %v720_v9  ;;  %v2089_v9 = vld [vmem:[#allocation19_spill] sm:$0xff] }
 0x2bc   : > { %v903_v63 = vadd.f32 %v1759_v23, %v902_v48  ;;  %v799_v48 = vmul.f32 1.442695, %v718_v15  ;;  %1264 = vpow2.f32 %v791_v56  ;;  %v827_v56 = vmul.f32 1.442695, %v732_v26 }
 0x2bd   : > { %1266 = vpow2.f32 %v795_v28  ;;  %v811_v26 = vmul.f32 1.442695, %v724_v53 }
 0x2be   : > { %v904_v4 = vadd.f32 %v1764_v33, %v903_v63  ;;  %v1808_v63 = vpop.eup %1238  ;;  %1268 = vpow2.f32 %v799_v48 }
 0x2bf   : > { %v1813_v15 = vpop.eup %1240  ;;  %1270 = vpow2.f32 %v815_v30 }
 0x2c0   : > { %v905_v35 = vadd.f32 %v1768_v0, %v904_v4  ;;  %2084 = vst [vmem:[#allocation11_spill] sm:$0xff] %v1813_v15  ;;  %v823_v4 = vmul.f32 1.442695, %v730_v59  ;;  %v1817_v8 = vpop.eup %1242  ;;  %1272 = vpow2.f32 %v819_v3  ;;  %v2087_v59 = vld [vmem:[#allocation18_spill] sm:$0xff]  ;;  %v759_v3 = vsub.f32 %v2089_v9, %v1657_v57 }
 0x2c1   : > { %2085 = vst [vmem:[#allocation12_spill] sm:$0xff] %v1817_v8  ;;  %v1822_v1 = vpop.eup %1244  ;;  %v757_v28 = vsub.f32 %v2087_v59, %v1657_v57  ;;  %v754_v59 = vsub.f32 %v1586_v40, %v1720_v43 }
 0x2c2   : > { %v906_v32 = vadd.f32 %v1773_v37, %v905_v35  ;;  %2086 = vst [vmem:[#allocation13_spill] sm:$0xff] %v1822_v1  ;;  %v1824_v35 = vpop.eup %1246  ;;  %1274 = vpow2.f32 %v823_v4 }
 0x2c3   : > { %v1827_v22 = vpop.eup %1248  ;;  %1276 = vpow2.f32 %v827_v56  ;;  %v877_v56 = vmul.f32 1.442695, %v757_v28  ;;  %v763_v28 = vsub.f32 %v1633_v16, %v1657_v57 }
 0x2c4   : > { %v907_v14 = vadd.f32 %v1808_v63, %v906_v32  ;;  %v807_v32 = vmul.f32 1.442695, %v722_v44  ;;  %v1831_v5 = vpop.eup %1250  ;;  %v930_v48 = vadd.f32 %v1827_v22, %v1824_v35  ;;  %v761_v44 = vsub.f32 %v1621_v46, %v1657_v57 }
 0x2c5   : > { %2088 = vst [vmem:[#allocation14_spill] sm:$0xff] %v1831_v5  ;;  %v1836_v30 = vpop.eup %1252  ;;  %1278 = vpow2.f32 %v803_v62  ;;  %v736_v57 = vsub.f32 %v1538_v36, %v1720_v43 }
 0x2c6   : > { %v908_v10 = vadd.f32 %v1813_v15, %v907_v14  ;;  %v1840_v14 = vpop.eup %1254  ;;  %1280 = vpow2.f32 %v807_v32  ;;  %v756_v15 = vsub.f32 %v1594_v17, %v1720_v43  ;;  %v885_v40 = vmul.f32 1.442695, %v761_v44 }
 0x2c7   : > { %v1846_v53 = vpop.eup %1256  ;;  %1282 = vpow2.f32 %v811_v26  ;;  %v734_v17 = vsub.f32 %v1534_v34, %v1720_v43  ;;  %v871_v26 = vmul.f32 1.442695, %v754_v59 }
 0x2c8   : > { %v909_v24 = vadd.f32 %v1817_v8, %v908_v10  ;;  %v931_v10 = vadd.f32 %v1836_v30, %v930_v48  ;;  %v1850_v8 = vpop.eup %1258  ;;  %1284 = vpow2.f32 %v877_v56  ;;  %v738_v56 = vsub.f32 %v1542_v38, %v1720_v43 }
 0x2c9   : > { %2090 = vst [vmem:[#allocation15_spill] sm:$0xff] %v1850_v8  ;;  %v1856_v62 = vpop.eup %1260 }
 0x2ca   : > { %v910_v4 = vadd.f32 %v1822_v1, %v909_v24  ;;  %v932_v46 = vadd.f32 %v1846_v53, %v931_v10  ;;  %v881_v24 = vmul.f32 1.442695, %v759_v3  ;;  %v1858_v48 = vpop.eup %1262 }
 0x2cc   : > { %v911_v9 = vadd.f32 %v1831_v5, %v910_v4  ;;  %v933_v1 = vadd.f32 %v1856_v62, %v932_v46  ;;  %v1864_v4 = vpop.eup %1264  ;;  %v875_v5 = vmul.f32 1.442695, %v756_v15  ;;  %1286 = vpow2.f32 %v881_v24 }
 0x2cd   : > { %v1868_v10 = vpop.eup %1266  ;;  %1288 = vpow2.f32 %v885_v40  ;;  %v831_v24 = vmul.f32 1.442695, %v734_v17  ;;  %v835_v40 = vmul.f32 1.442695, %v736_v57  ;;  %v839_v17 = vmul.f32 1.442695, %v738_v56 }
 0x2ce   : > { %v912_v32 = vadd.f32 %v1840_v14, %v911_v9  ;;  %v934_v6 = vadd.f32 %v1858_v48, %v933_v1  ;;  %v1872_v16 = vpop.eup %1268  ;;  %v889_v9 = vmul.f32 1.442695, %v763_v28  ;;  %1290 = vpow2.f32 %v871_v26 }
 0x2cf   : > { %v1271_v44 = vpop.eup %1270  ;;  %1292 = vpow2.f32 %v875_v5  ;;  %v740_v28 = vsub.f32 %v1546_v42, %v1720_v43  ;;  %v742_v5 = vsub.f32 %v1550_v45, %v1720_v43 }
 0x2d0   : > { %v913_v3 = vadd.f32 %v1850_v8, %v912_v32  ;;  %v935_v59 = vadd.f32 %v1864_v4, %v934_v6  ;;  %v1273_v46 = vpop.eup %1272  ;;  %1294 = vpow2.f32 %v889_v9  ;;  %v746_v8 = vsub.f32 %v1558_v49, %v1720_v43 }
 0x2d1   : > { %v1880_v15 = vpop.eup %1274  ;;  %1296 = vpow2.f32 %v831_v24  ;;  %v984_v9 = vpack.c.bf16 %v1273_v46, %v1271_v44  ;;  %v843_v56 = vmul.f32 1.442695, %v740_v28  ;;  %v764_v24 = vsub.f32 %v1653_v18, %v1720_v43 }
 0x2d2   : > { %v914_v34 = vadd.f32 %v1777_v13, %v913_v3  ;;  %v936_v36 = vadd.f32 %v1868_v10, %v935_v59  ;;  %v1884_v32 = vpop.eup %1276  ;;  %1298 = vpow2.f32 %v835_v40  ;;  %v748_v28 = vsub.f32 %v1562_v51, %v1720_v43 }
 0x2d3   : > { %v986_v26 = vpack.c.bf16 %v1884_v32, %v1880_v15  ;;  %v1279_v3 = vpop.eup %1278  ;;  %1300 = vpow2.f32 %v839_v17  ;;  %v758_v18 = vsub.f32 %v1602_v25, %v1720_v43  ;;  %v760_v51 = vsub.f32 %v1615_v39, %v1720_v43 }
 0x2d4   : > { %v915_v1 = vadd.f32 %v1782_v7, %v914_v34  ;;  %v937_v38 = vadd.f32 %v1872_v16, %v936_v36  ;;  %v985_v34 = vpack.c.bf16 %v1808_v63, %v1773_v37  ;;  %v1281_v59 = vpop.eup %1280  ;;  %v744_v36 = vsub.f32 %v1554_v47, %v1720_v43 }
 0x2d5   : > { %1003 = vmatprep.subr.bf16.mxu0 %v986_v26  ;;  %v762_v63 = vsub.f32 %v1627_v12, %v1720_v43  ;;  %v983_v47 = vpack.c.bf16 %v1768_v0, %v1764_v33  ;;  %v750_v12 = vsub.f32 %v1570_v55, %v1720_v43  ;;  %1302 = vpow2.f32 %v843_v56 }
 0x2d6   : > { %v916_v6 = vadd.f32 %v1788_v2, %v915_v1  ;;  %v938_v57 = vadd.f32 %v1279_v3, %v937_v38  ;;  %v1283_v1 = vpop.eup %1282  ;;  %1004 = vmatpush1.bf16.msra.mxu0 %v985_v34  ;;  %v851_v40 = vmul.f32 1.442695, %v744_v36  ;;  %v855_v0 = vmul.f32 1.442695, %v746_v8 }
 0x2d7   : > { %1005 = vmatprep.subr.bf16.mxu0 %v984_v9  ;;  %v982_v26 = vpack.c.bf16 %v1283_v1, %v1281_v59  ;;  %v1909_v34 = vpop.eup %1284  ;;  %v891_v55 = vmul.f32 1.442695, %v764_v24  ;;  %v981_v25 = vpack.c.bf16 %v1759_v23, %v1755_v41  ;;  %v980_v8 = vpack.c.bf16 %v1279_v3, %v1872_v16 }
 0x2d8   : > { %v917_v42 = vadd.f32 %v1793_v31, %v916_v6  ;;  %v939_v37 = vadd.f32 %v1281_v59, %v938_v57  ;;  %v847_v6 = vmul.f32 1.442695, %v742_v5  ;;  %v752_v36 = vsub.f32 %v1578_v61, %v1720_v43 }
 0x2d9   : > { %v1917_v5 = vpop.eup %1286  ;;  %v859_v39 = vmul.f32 1.442695, %v748_v28  ;;  %v879_v16 = vmul.f32 1.442695, %v758_v18  ;;  %v883_v3 = vmul.f32 1.442695, %v760_v51  ;;  %v979_v61 = vpack.c.bf16 %v1750_v58, %v1746_v52 }
 0x2da   : > { %v918_v45 = vadd.f32 %v1799_v29, %v917_v42  ;;  %v940_v49 = vadd.f32 %v1283_v1, %v939_v37  ;;  %1006 = vmatpush1.bf16.msra.mxu0 %v983_v47  ;;  %v1920_v59 = vpop.eup %1288  ;;  %v887_v42 = vmul.f32 1.442695, %v762_v63  ;;  %1304 = vpow2.f32 %v847_v6 }
 0x2db   : > { %1007 = vmatprep.subr.bf16.mxu0 %v982_v26  ;;  %v1926_v57 = vpop.eup %1290  ;;  %1306 = vpow2.f32 %v851_v40  ;;  %v978_v63 = vpack.c.bf16 %v1868_v10, %v1864_v4  ;;  %v867_v24 = vmul.f32 1.442695, %v752_v36  ;;  %v977_v52 = vpack.c.bf16 %v1739_v60, %v1732_v27 }
 0x2dc   : > { %v919_v38 = vadd.f32 %v1804_v50, %v918_v45  ;;  %v941_v17 = vadd.f32 %v1271_v44, %v940_v49  ;;  %v1930_v44 = vpop.eup %1292  ;;  %v863_v45 = vmul.f32 1.442695, %v750_v12  ;;  %1308 = vpow2.f32 %v855_v0 }
 0x2dd   : > { %v998_v23 = vpack.c.bf16 %v1930_v44, %v1926_v57  ;;  %1310 = vpow2.f32 %v887_v42  ;;  %v976_v4 = vpack.c.bf16 %v1858_v48, %v1856_v62  ;;  %v975_v49 = vpack.c.bf16 %v1725_v54, %v1716_v20 }
 0x2de   : > { %v920_v33 = vadd.f32 %v1909_v34, %v919_v38  ;;  %v942_v1 = vadd.f32 %v1273_v46, %v941_v17  ;;  %1008 = vmatpush1.bf16.msra.mxu0 %v981_v25  ;;  %v1295_v46 = vpop.eup %1294  ;;  %1312 = vpow2.f32 %v891_v55  ;;  %v974_v27 = vpack.c.bf16 %v1846_v53, %v1836_v30  ;;  %v2091_v53 = vld [vmem:[#allocation8_spill] sm:$0xff] }
 0x2df   : > { %1009 = vmatprep.subr.bf16.mxu0 %v980_v8  ;;  %1314 = vpow2.f32 %v859_v39  ;;  %v973_v48 = vpack.c.bf16 %v1709_v11, %v1702_v21  ;;  %v971_v17 = vpack.c.bf16 %v2091_v53, %v1690_v19  ;;  %v999_v8 = vpack.c.bf16 %v1917_v5, %v1909_v34 }
 0x2e0   : > { %v921_v9 = vadd.f32 %v1917_v5, %v920_v33  ;;  %v943_v41 = vadd.f32 %v1880_v15, %v942_v1  ;;  %v1945_v15 = vpop.eup %1296  ;;  %1316 = vpow2.f32 %v863_v45  ;;  %v972_v33 = vpack.c.bf16 %v1827_v22, %v1824_v35 }
 0x2e1   : > { %v1948_v47 = vpop.eup %1298  ;;  %1318 = vpow2.f32 %v879_v16  ;;  %v2093_v34 = vpack.c.bf16 %v1793_v31, %v1788_v2  ;;  %v2097_v2 = vld [vmem:[#allocation14_spill] sm:$0xff]  ;;  %v1067_v53 = vstv %s1058_s14 }
 0x2e2   : > { %v922_v56 = vadd.f32 %v1920_v59, %v921_v9  ;;  %v944_v37 = vadd.f32 %v1884_v32, %v943_v41  ;;  %1010 = vmatpush1.bf16.msra.mxu0 %v979_v61  ;;  %1320 = vpow2.f32 %v883_v3  ;;  %v1955_v10 = vpop.eup %1300  ;;  %v1001_v9 = vpack.c.bf16 %v1295_v46, %v1920_v59  ;;  %v333_v41 = vpop.f32.mrf.mxu0 }
 0x2e3   : > { %1011 = vmatprep.subr.bf16.mxu0 %v978_v63  ;;  %1322 = vpow2.f32 %v867_v24  ;;  %v1303_v38 = vpop.eup %1302  ;;  %v2092_v59 = vpack.c.bf16 %v1804_v50, %v1799_v29  ;;  %v2095_v29 = vld [vmem:[#allocation15_spill] sm:$0xff]  ;;  %v988_v24 = vpack.c.bf16 %v1948_v47, %v1945_v15 }
 0x2e4   : > { %v1940_v43 = vadd.f32 %v1295_v46, %v922_v56  ;;  %v945_v6 = vadd.f32 %v1945_v15, %v944_v37  ;;  %v335_v5 = vpop.f32.mrf.mxu0  ;;  %v991_v50 = vpack.c.bf16 %v2095_v29, %v1840_v14  ;;  %v990_v61 = vpack.c.bf16 %v1303_v38, %v1955_v10  ;;  %v2096_v37 = vld [vmem:[#allocation13_spill] sm:$0xff]  ;;  %v1332_v29 = vld [vmem:[%s1395_s23 + $0x20] sm:$0xff] }
 0x2e5   : > { %v989_v31 = vpack.c.bf16 %v2097_v2, %v2096_v37  ;;  %v1333_v37 = vld [vmem:[%s1395_s23 + $0x28] sm:$0xff] }
 0x2e6   : > { %v946_v58 = vadd.f32 %v1948_v47, %v945_v6  ;;  %1012 = vmatpush1.bf16.msra.mxu0 %v977_v52  ;;  %v2098_v6 = vld [vmem:[#allocation11_spill] sm:$0xff]  ;;  %v2099_v52 = vld [vmem:[#allocation12_spill] sm:$0xff]  ;;  %v924_v15 = vrot.slane %v1940_v43, 4 }
 0x2e7   : > { %1013 = vmatprep.subr.bf16.mxu0 %v976_v4  ;;  %v1305_v60 = vpop.eup %1304  ;;  %v987_v14 = vpack.c.bf16 %v2099_v52, %v2098_v6  ;;  %v1335_v6 = vld [vmem:[%s1395_s23 + $0x38] sm:$0xff] }
 0x2e8   : > { %v947_v32 = vadd.f32 %v1955_v10, %v946_v58  ;;  %v1307_v28 = vpop.eup %1306  ;;  %v2100_v10 = vld [vmem:[#allocation4_spill] sm:$0xff] }
 0x2e9   : > { %v1309_v62 = vpop.eup %1308  ;;  %v992_v3 = vpack.c.bf16 %v1307_v28, %v1305_v60 }
 0x2ea   : > { %v948_v26 = vadd.f32 %v1303_v38, %v947_v32  ;;  %1014 = vmatpush1.bf16.msra.mxu0 %v975_v49  ;;  %v1311_v18 = vpop.eup %1310  ;;  %v2101_v32 = vld [vmem:[#allocation3_spill] sm:$0xff] }
 0x2eb   : > { %1015 = vmatprep.subr.bf16.mxu0 %v974_v27  ;;  %v1313_v0 = vpop.eup %1312  ;;  %v2102_v38 = vpack.c.bf16 %v2100_v10, %v2101_v32 }
 0x2ec   : > { %v949_v12 = vadd.f32 %v1305_v60, %v948_v26  ;;  %v1315_v20 = vpop.eup %1314  ;;  %v1002_v55 = vpack.c.bf16 %v1313_v0, %v1311_v18  ;;  %v925_v60 = vadd.f32 %v924_v15, %v1940_v43 }
 0x2ed   : > { %v1317_v30 = vpop.eup %1316  ;;  %v994_v16 = vpack.c.bf16 %v1315_v20, %v1309_v62 }
 0x2ee   : > { %v950_v40 = vadd.f32 %v1307_v28, %v949_v12  ;;  %1016 = vmatpush1.bf16.msra.mxu0 %v973_v48  ;;  %v1319_v51 = vpop.eup %1318  ;;  %v926_v12 = vrot.slane %v925_v60, 2 }
 0x2ef   : > { %1017 = vmatprep.subr.bf16.mxu0 %v972_v33  ;;  %v1321_v25 = vpop.eup %1320 }
 0x2f0   : > { %v951_v54 = vadd.f32 %v1309_v62, %v950_v40  ;;  %v1323_v11 = vpop.eup %1322  ;;  %v1000_v22 = vpack.c.bf16 %v1321_v25, %v1319_v51  ;;  %v927_v48 = vadd.f32 %v926_v12, %v925_v60 }
 0x2f1   : > { %v996_v45 = vpack.c.bf16 %v1323_v11, %v1317_v30 }
 0x2f2   : > { %v952_v42 = vadd.f32 %v1315_v20, %v951_v54  ;;  %1018 = vmatpush1.bf16.msra.mxu0 %v971_v17  ;;  %v928_v40 = vrot.slane %v927_v48, 1 }
 0x2f3   : > { %1019 = vmatprep.subr.bf16.mxu0 %v1002_v55 }
 0x2f4   : > { %v953_v21 = vadd.f32 %v1317_v30, %v952_v42 }
 0x2f6   : > { %v954_v35 = vadd.f32 %v1323_v11, %v953_v21  ;;  %1020 = vmatpush2.bf16.msra.mxu0 %v1001_v9  ;;  %v1328_v21 = vld [vmem:[%s1395_s23] sm:$0xff] }
 0x2f7   : > { %1021 = vmatprep.subr.bf16.mxu0 %v1000_v22 }
 0x2f8   : > { %v955_v1 = vadd.f32 %v1926_v57, %v954_v35  ;;  %v2094_v57 = vpack.c.bf16 %v1782_v7, %v1777_v13 }
 0x2fa   : > { %v956_v19 = vadd.f32 %v1930_v44, %v955_v1  ;;  %1022 = vmatpush2.bf16.msra.mxu0 %v999_v8  ;;  %v247_v44 = vpop.permute.xlu0 %246  ;;  %v1329_v1 = vld [vmem:[%s1395_s23 + $0x8] sm:$0xff] }
 0x2fb   : > { %1023 = vmatprep.subr.bf16.mxu0 %v998_v23  ;;  %v337_v23 = vpop.f32.mrf.mxu0  ;;  %v336_v58 = vadd.f32 %v335_v5, %v247_v44  ;;  %v334_v26 = vadd.f32 %v333_v41, %v247_v44 }
 0x2fc   : > { %v957_v36 = vadd.f32 %v1319_v51, %v956_v19 }
 0x2fd   : > { %v339_v63 = vpop.f32.mrf.mxu0 }
 0x2fe   : > { %v958_v39 = vadd.f32 %v1321_v25, %v957_v36  ;;  %1024 = vmatpush2.bf16.msra.mxu0 %v2092_v59  ;;  %v252_v13 = vpop.permute.xlu0 %251 }
 0x2ff   : > { %1025 = vmatprep.subr.bf16.mxu0 %v996_v45  ;;  %v340_v7 = vadd.f32 %v339_v63, %v252_v13  ;;  %v338_v49 = vadd.f32 %v337_v23, %v252_v13  ;;  %v1330_v45 = vld [vmem:[%s1395_s23 + $0x10] sm:$0xff] }
 0x300   : > { %v959_v56 = vadd.f32 %v1311_v18, %v958_v39 }
 0x301   : > { %v970_v4 = vpack.c.bf16 %v340_v7, %v336_v58  ;;  %v969_v27 = vpack.c.bf16 %v338_v49, %v334_v26 }
 0x302   : > { %v960_v46 = vadd.f32 %v1313_v0, %v959_v56  ;;  %1026 = vmatpush2.bf16.msra.mxu0 %v2093_v34  ;;  %v929_v0 = vadd.f32 %v928_v40, %v927_v48 }
 0x303   : > { %1027 = vmatprep.subr.bf16.mxu0 %v994_v16  ;;  %v1331_v16 = vld [vmem:[%s1395_s23 + $0x18] sm:$0xff] }
 0x304   : > { %v961_v47 = vrot.slane %v960_v46, 4  ;;  %1324 = vrcp.f32 %v929_v0 }
 0x306   : > { %1028 = vmatpush2.bf16.msra.mxu0 %v2094_v57  ;;  %v962_v28 = vadd.f32 %v961_v47, %v960_v46 }
 0x307   : > { %1029 = vmatprep.subr.bf16.mxu0 %v992_v3 }
 0x308   : > { %v963_v62 = vrot.slane %v962_v28, 2 }
 0x30a   : > { %1030 = vmatpush2.bf16.msra.mxu0 %v991_v50  ;;  %v964_v18 = vadd.f32 %v963_v62, %v962_v28 }
 0x30b   : > { %1031 = vmatprep.subr.bf16.mxu0 %v990_v61 }
 0x30c   : > { %v965_v33 = vrot.slane %v964_v18, 1 }
 0x30e   : > { %1032 = vmatpush2.bf16.msra.mxu0 %v989_v31  ;;  %v966_v20 = vadd.f32 %v965_v33, %v964_v18 }
 0x30f   : > { %1033 = vmatprep.subr.bf16.mxu0 %v988_v24  ;;  %v1334_v24 = vld [vmem:[%s1395_s23 + $0x30] sm:$0xff] }
 0x310   : > { %1326 = vrcp.f32 %v966_v20 }
 0x311   : > { %v1325_v54 = vpop.eup %1324 }
 0x312   : > { %1034 = vmatpush2.bf16.msra.mxu0 %v987_v14 }
 0x315   : > { %1036 = vmatmul.mubr.bf16.vlgmr.msra.gmra.mxu0 %v2102_v38 }
 0x316   : > { %1045 = vmatprep.mubr.bf16.mxu0 %v970_v4 }
 0x31d   : > { %1046 = vmatmul.mubr.bf16.gmra.mxu0 %v969_v27  ;;  %v1327_v43 = vpop.eup %1326 }
 0x3d5   : > { %v1037_v30 = vpop.f32.mrf.mxu0 }
 0x3d6   : > { %v1059_v17 = vmul.f32 %v1325_v54, %v1037_v30 }
 0x3d7   : > { %v1039_v51 = vpop.f32.mrf.mxu0 }
 0x3d8   : > { %v1068_v42 = vmul.f32 %v1067_v53, %v1059_v17  ;;  %v1060_v55 = vmul.f32 %v1327_v43, %v1039_v51 }
 0x3d9   : > { %v1041_v25 = vpop.f32.mrf.mxu0 }
 0x3da   : > { %v1076_v11 = vadd.f32 %v1328_v21, %v1068_v42  ;;  %v1069_v9 = vmul.f32 %v1067_v53, %v1060_v55  ;;  %v1061_v35 = vmul.f32 %v1325_v54, %v1041_v25 }
 0x3db   : > { %v1043_v22 = vpop.f32.mrf.mxu0 }
 0x3dc   : > { %1084 = vst [vmem:[%s2004_s3] sm:$0xff] %v1076_v11  ;;  %v1077_v8 = vadd.f32 %v1329_v1, %v1069_v9  ;;  %v1070_v19 = vmul.f32 %v1067_v53, %v1061_v35  ;;  %v1062_v36 = vmul.f32 %v1327_v43, %v1043_v22 }
 0x3dd   : > { %v1047_v39 = vpop.f32.mrf.mxu0 }
 0x3de   : > { %1085 = vst [vmem:[%s2004_s3 + $0x8] sm:$0xff] %v1077_v8  ;;  %v1078_v59 = vadd.f32 %v1330_v45, %v1070_v19  ;;  %v1071_v56 = vmul.f32 %v1067_v53, %v1062_v36  ;;  %v1063_v41 = vmul.f32 %v1325_v54, %v1047_v39 }
 0x3df   : > { %v1049_v46 = vpop.f32.mrf.mxu0 }
 0x3e0   : > { %1086 = vst [vmem:[%s2004_s3 + $0x10] sm:$0xff] %v1078_v59  ;;  %v1079_v34 = vadd.f32 %v1331_v16, %v1071_v56  ;;  %v1072_v5 = vmul.f32 %v1067_v53, %v1063_v41  ;;  %v1064_v3 = vmul.f32 %v1327_v43, %v1049_v46 }
 0x3e1   : > { %v1051_v57 = vpop.f32.mrf.mxu0 }
 0x3e2   : > { %1087 = vst [vmem:[%s2004_s3 + $0x18] sm:$0xff] %v1079_v34  ;;  %v1080_v50 = vadd.f32 %v1332_v29, %v1072_v5  ;;  %v1073_v44 = vmul.f32 %v1067_v53, %v1064_v3  ;;  %v1065_v23 = vmul.f32 %v1325_v54, %v1051_v57 }
 0x3e3   : > { %v1053_v61 = vpop.f32.mrf.mxu0 }
 0x3e4   : > { %1088 = vst [vmem:[%s2004_s3 + $0x20] sm:$0xff] %v1080_v50  ;;  %v1081_v2 = vadd.f32 %v1333_v37, %v1073_v44  ;;  %v1074_v31 = vmul.f32 %v1067_v53, %v1065_v23  ;;  %v1066_v63 = vmul.f32 %v1327_v43, %v1053_v61 }
 0x3e6   : > { %1089 = vst [vmem:[%s2004_s3 + $0x28] sm:$0xff] %v1081_v2  ;;  %v1082_v13 = vadd.f32 %v1334_v24, %v1074_v31  ;;  %v1075_v7 = vmul.f32 %v1067_v53, %v1066_v63 }
 0x3e8   : > { %1090 = vst [vmem:[%s2004_s3 + $0x30] sm:$0xff] %v1082_v13  ;;  %v1083_v52 = vadd.f32 %v1335_v6, %v1075_v7 }
 0x3ea   : > { %1091 = vst [vmem:[%s2004_s3 + $0x38] sm:$0xff] %v1083_v52 }
 0x3eb PF: > { %s15_s17 = sadd.s32 1, %s1342_s17  }
 0x3ec   : > { %p12_p4 = scmp.ge.s32.totalorder %s15_s17, 4  }
 0x3ee   :  { %14 = sbr.rel (!%p12_p4) target bundleno = 2 (0x2), region = 66 }

</bundles_post_ra>
